<compile_context>
chip_gen: v5e
topology: v5e:2x2
jax: 0.10.0
libtpu: 0.0.40
codegen_flags: <defaults>
</compile_context>

<pallas_src>
import math

import jax
import jax.numpy as jnp
from jax.experimental import pallas as pl
from jax.experimental.pallas import tpu as pltpu

NUM_RELATIONS = 3            # len(adj_lists) == len(intraggs) in the reference

LANE = 128
SUBLANE = 8
MAX_TILE_N = 2048
VMEM_BUDGET_BYTES = 40 * 1024 * 1024   # leaves headroom in v7x's 64 MiB VMEM
VMEM_LIMIT_BYTES = 48 * 1024 * 1024    # v6e/v5e (128 MiB physical) could go higher


def _round_up(x, m):
    return (x + m - 1) // m * m


# ----------------------------------------------------------------------------
# Pallas kernel: fused (self + sum_r rel_r) @ W_scaled, relu epilogue
# ----------------------------------------------------------------------------
def _mean_inter_agg_kernel(*refs):
    # refs = (self_ref, rel_0_ref, ..., rel_{R-1}_ref, w_ref, out_ref)
    *feat_refs, w_ref, out_ref = refs
    # Fused (R+1)-way feature sum: VPU adds are free filler under the DMA, and
    # no pre-summed [n, D] intermediate ever round-trips through HBM.
    x = feat_refs[0][...].astype(jnp.float32)
    for fr in feat_refs[1:]:
        x = x + fr[...].astype(jnp.float32)
    # 1/(R+1) scale is folded into w_ref at init, so epilogue is just relu.
    acc = jnp.dot(x, w_ref[...], preferred_element_type=jnp.float32)
    out_ref[...] = jnp.maximum(acc, 0.0).astype(out_ref.dtype)


def mean_inter_agg_pallas(self_feats, relation_feats, weight_scaled,
                          *, stream_dtype=jnp.bfloat16):
    """Fused 'Mean' inter-relation aggregation.

    self_feats:     [n, D]
    relation_feats: list of R arrays, each [n, D]
    weight_scaled:  [D, E]  (== W / (R + 1), pre-scaled at init)
    returns:        [n, E] = relu((self + sum_r rel_r) @ weight_scaled)
    """
    num_feats = 1 + len(relation_feats)
    n, d = self_feats.shape
    e = weight_scaled.shape[1]

    # --- stream features in bf16: ~2x fewer HBM read bytes on this mem-bound op ---
    feats = [self_feats.astype(stream_dtype)] + \
            [rf.astype(stream_dtype) for rf in relation_feats]

    # --- pad node axis only to the sublane multiple (<= 7 wasted rows) ---
    n_pad = _round_up(max(n, SUBLANE), SUBLANE)
    if n_pad != n:
        feats = [jnp.pad(f, ((0, n_pad - n), (0, 0))) for f in feats]

    # --- derive tile_n from a VMEM budget (everything double-buffered) ---
    stream_bytes = jnp.dtype(stream_dtype).itemsize
    bytes_per_row = 2 * num_feats * d * stream_bytes + 2 * e * 4   # inputs + out
    w_bytes = 2 * d * e * 4                                        # resident W
    tile_n = max(SUBLANE, (VMEM_BUDGET_BYTES - w_bytes) // bytes_per_row)
    tile_n = max(SUBLANE, (tile_n // SUBLANE) * SUBLANE)
    tile_n = min(tile_n, MAX_TILE_N)
    # ensure grid >= 2 whenever there are enough rows, so both v7x TCs get work
    tile_n = min(tile_n, _round_up(pl.cdiv(n_pad, 2), SUBLANE))
    grid = (pl.cdiv(n_pad, tile_n),)

    feat_spec = pl.BlockSpec((tile_n, d), lambda i: (i, 0))   # streamed per tile
    # TODO(synk): on v7x, pipeline_mode=pl.Buffered(1) on this grid-invariant
    # weight spec would drop its second VMEM buffer (~D*E*4 bytes saved).
    w_spec = pl.BlockSpec((d, e), lambda i: (0, 0))           # VMEM-resident W
    out_spec = pl.BlockSpec((tile_n, e), lambda i: (i, 0))    # unpadded output

    out = pl.pallas_call(
        _mean_inter_agg_kernel,
        out_shape=jax.ShapeDtypeStruct((n_pad, e), jnp.float32),
        grid=grid,
        in_specs=[feat_spec] * num_feats + [w_spec],
        out_specs=out_spec,
        compiler_params=pltpu.CompilerParams(
            dimension_semantics=("parallel",),   # shard tiles across v7x's 2 TCs
            vmem_limit_bytes=VMEM_LIMIT_BYTES,
        ),
    )(*feats, weight_scaled)

    return out[:n] if n_pad != n else out


# ----------------------------------------------------------------------------
# Module-level glue (plain JAX): feature lookup, intra-relation mean agg,
# deterministic Xavier-uniform parameter init.
# ----------------------------------------------------------------------------
def xavier_uniform(key, shape):
    fan_in, fan_out = shape[0], shape[1]
    bound = math.sqrt(6.0 / (fan_in + fan_out))
    return jax.random.uniform(key, shape, jnp.float32, -bound, bound)


class GNNInterAggJax:
    """JAX/Pallas port of GNNInterAgg with inter='GNN' (i.e. 'Mean')."""

    def __init__(self, features, feature_dim, embed_dim, neighbor_idx, key,
                 num_relations=NUM_RELATIONS):
        # features: [num_nodes, feature_dim] embedding table
        # neighbor_idx: [num_relations, num_nodes, k] sampled neighbor ids
        #               (stands in for adj_lists + intra-relation aggregators)
        self.features = features
        self.feat_dim = feature_dim
        self.embed_dim = embed_dim
        self.neighbor_idx = neighbor_idx
        self.num_relations = num_relations
        k_w, k_alpha, k_a = jax.random.split(key, 3)
        self.weight = xavier_uniform(k_w, (feature_dim, embed_dim))
        # PyTorch reference hard-codes /4.0 on the Mean path; with R=3 this is
        # exactly 1/(R+1). Fold the scale into W once at init (hot path is relu-only).
        self.weight_scaled = self.weight * (1.0 / float(num_relations + 1))
        # alpha / a are unused on the 'GNN'/'Mean' path but initialized for parity
        self.alpha = xavier_uniform(k_alpha, (embed_dim, num_relations))
        self.a = xavier_uniform(k_a, (2 * embed_dim, 1))

    def _intra_agg(self, rel, nodes):
        # TODO(synk): real intra-relation aggregators operate on adjacency *sets*;
        # a mean over fixed-k sampled neighbor features stands in here. Long term,
        # fuse this gather+mean into the kernel via PrefetchScalarGridSpec row
        # gather (or manual make_async_copy) from an HBM-resident feature table —
        # for real graphs the [n, k, D] intermediate dominates HBM traffic.
        neigh_ids = self.neighbor_idx[rel][nodes]          # [n, k]
        neigh_feats = self.features[neigh_ids]             # [n, k, D]
        return jnp.mean(neigh_feats, axis=1)               # [n, D]

    def forward(self, nodes):
        nodes = jnp.asarray(nodes, dtype=jnp.int32)
        relation_feats = [
            self._intra_agg(r, nodes) for r in range(self.num_relations)
        ]                                                   # R x [n, D]
        self_feats = self.features[nodes]                   # [n, D]
        # Hot path: single fused Pallas kernel
        return mean_inter_agg_pallas(self_feats, relation_feats, self.weight_scaled)


# ----------------------------------------------------------------------------
def _reference(self_feats, relation_feats, weight):
    center_h = self_feats @ weight
    agg = jnp.zeros_like(center_h)
    for rf in relation_feats:
        agg = agg + rf @ weight
    return jnp.maximum((center_h + agg) / 4.0, 0.0)


if __name__ == "__main__":
    key = jax.random.PRNGKey(0)
    k_feat, k_nb, k_param = jax.random.split(key, 3)

    num_nodes = 64
    feature_dim = 32
    embed_dim = 16
    n_batch = 8
    k_neighbors = 5

    features = jax.random.normal(k_feat, (num_nodes, feature_dim), jnp.float32)
    neighbor_idx = jax.random.randint(
        k_nb, (NUM_RELATIONS, num_nodes, k_neighbors), 0, num_nodes
    )

    model = GNNInterAggJax(features, feature_dim, embed_dim, neighbor_idx, k_param)

    nodes = jnp.arange(n_batch, dtype=jnp.int32)
    out = jax.block_until_ready(model.forward(nodes))
    assert out.shape == (n_batch, embed_dim)
    assert bool(jnp.all(jnp.isfinite(out)))

    # sanity check against plain-JAX f32 reference of mean_inter_agg
    self_feats = features[nodes]
    relation_feats = [model._intra_agg(r, nodes) for r in range(NUM_RELATIONS)]
    ref = _reference(self_feats, relation_feats, model.weight)
    # bf16-streamed inputs + feature-sum-before-matmul vs f32 reference:
    # expect ~0.4% relative error, comfortably within this tolerance.
    max_err = float(jnp.max(jnp.abs(out - ref)))
    assert jnp.allclose(out, ref, atol=2e-2, rtol=2e-2), max_err

    print("KERNEL_OK")
</pallas_src>

<mosaic_0001>
module attributes {stable_mosaic.version = 11 : i64} {
  func.func @_mean_inter_agg_kernel(%arg0: i32, %arg1: memref<8x32xbf16, #tpu.memory_space<vmem>>, %arg2: memref<8x32xbf16, #tpu.memory_space<vmem>>, %arg3: memref<8x32xbf16, #tpu.memory_space<vmem>>, %arg4: memref<8x32xbf16, #tpu.memory_space<vmem>>, %arg5: memref<32x16xf32, #tpu.memory_space<vmem>>, %arg6: memref<8x16xf32, #tpu.memory_space<vmem>>) attributes {dimension_semantics = [#tpu.dimension_semantics<parallel>], iteration_bounds = array<i64: 1>, scalar_prefetch = 0 : i64, scratch_operands = 0 : i64, tpu.core_type = #tpu.core_type<tc>, window_params = [{transform_indices = @transform_0, window_bounds = array<i64: 8, 32>}, {transform_indices = @transform_1, window_bounds = array<i64: 8, 32>}, {transform_indices = @transform_2, window_bounds = array<i64: 8, 32>}, {transform_indices = @transform_3, window_bounds = array<i64: 8, 32>}, {pipeline_mode = #tpu.pipeline_mode<synchronous>, transform_indices = @transform_4, window_bounds = array<i64: 32, 16>}, {transform_indices = @transform_5, window_bounds = array<i64: 8, 16>}]} {
    %c0 = arith.constant 0 : index
    %c0_0 = arith.constant 0 : index
    %0 = vector.load %arg1[%c0, %c0_0] : memref<8x32xbf16, #tpu.memory_space<vmem>>, vector<8x32xbf16>
    %1 = arith.extf %0 : vector<8x32xbf16> to vector<8x32xf32>
    %c0_1 = arith.constant 0 : index
    %c0_2 = arith.constant 0 : index
    %2 = vector.load %arg2[%c0_1, %c0_2] : memref<8x32xbf16, #tpu.memory_space<vmem>>, vector<8x32xbf16>
    %3 = arith.extf %2 : vector<8x32xbf16> to vector<8x32xf32>
    %4 = arith.addf %1, %3 : vector<8x32xf32>
    %c0_3 = arith.constant 0 : index
    %c0_4 = arith.constant 0 : index
    %5 = vector.load %arg3[%c0_3, %c0_4] : memref<8x32xbf16, #tpu.memory_space<vmem>>, vector<8x32xbf16>
    %6 = arith.extf %5 : vector<8x32xbf16> to vector<8x32xf32>
    %7 = arith.addf %4, %6 : vector<8x32xf32>
    %c0_5 = arith.constant 0 : index
    %c0_6 = arith.constant 0 : index
    %8 = vector.load %arg4[%c0_5, %c0_6] : memref<8x32xbf16, #tpu.memory_space<vmem>>, vector<8x32xbf16>
    %9 = arith.extf %8 : vector<8x32xbf16> to vector<8x32xf32>
    %10 = arith.addf %7, %9 : vector<8x32xf32>
    %c0_7 = arith.constant 0 : index
    %c0_8 = arith.constant 0 : index
    %11 = vector.load %arg5[%c0_7, %c0_8] : memref<32x16xf32, #tpu.memory_space<vmem>>, vector<32x16xf32>
    %cst = arith.constant dense<0.000000e+00> : vector<8x16xf32>
    %12 = tpu.matmul %10, %11, %cst {dimension_numbers = #tpu.dot_dimension_numbers<[1], [0], [0], [1], [0, 0, 1, 1], [], []>} : vector<8x32xf32>, vector<32x16xf32>, vector<8x16xf32> -> vector<8x16xf32>
    %cst_9 = arith.constant 0.000000e+00 : f32
    %13 = vector.broadcast %cst_9 : f32 to vector<8x16xf32>
    %14 = arith.maximumf %12, %13 : vector<8x16xf32>
    %c0_10 = arith.constant 0 : index
    %c0_11 = arith.constant 0 : index
    %15 = vector.load %arg6[%c0_10, %c0_11] : memref<8x16xf32, #tpu.memory_space<vmem>>, vector<8x16xf32>
    tpu.vector_store %arg6[%c0_10, %c0_11], %14 {strides = array<i32>} : memref<8x16xf32, #tpu.memory_space<vmem>>, vector<8x16xf32>,
    return
  }
  func.func @transform_0(%arg0: i32) -> (i32, i32) {
    %c0_i32 = arith.constant 0 : i32
    %c0_i32_0 = arith.constant 0 : i32
    return %arg0, %c0_i32 : i32, i32
  }
  func.func @transform_1(%arg0: i32) -> (i32, i32) {
    %c0_i32 = arith.constant 0 : i32
    %c0_i32_0 = arith.constant 0 : i32
    return %arg0, %c0_i32 : i32, i32
  }
  func.func @transform_2(%arg0: i32) -> (i32, i32) {
    %c0_i32 = arith.constant 0 : i32
    %c0_i32_0 = arith.constant 0 : i32
    return %arg0, %c0_i32 : i32, i32
  }
  func.func @transform_3(%arg0: i32) -> (i32, i32) {
    %c0_i32 = arith.constant 0 : i32
    %c0_i32_0 = arith.constant 0 : i32
    return %arg0, %c0_i32 : i32, i32
  }
  func.func @transform_4(%arg0: i32) -> (i32, i32) {
    %c0_i32 = arith.constant 0 : i32
    %c0_i32_0 = arith.constant 0 : i32
    %c0_i32_1 = arith.constant 0 : i32
    return %c0_i32, %c0_i32_0 : i32, i32
  }
  func.func @transform_5(%arg0: i32) -> (i32, i32) {
    %c0_i32 = arith.constant 0 : i32
    %c0_i32_0 = arith.constant 0 : i32
    return %arg0, %c0_i32 : i32, i32
  }
}

</mosaic_0001>

<bundles_post_ra>
// kernel: tpu_custom_call.1
= control target key start
LH: loop header
LB: loop body
LE: loop exit
PB: predicated region body
PF: predicated region fallthrough
CT: control target
= control target key end

     0   :  { %s165_s0 = inlined_call_operand.vmem [shape: bf16[8,32], index: 0, kind: input, shape index: {}]   ;;  %s166_s1 = inlined_call_operand.vmem [shape: bf16[8,32], index: 1, kind: input, shape index: {}]   ;;  %s167_s2 = inlined_call_operand.vmem [shape: bf16[8,32], index: 2, kind: input, shape index: {}]   ;;  %s168_s3 = inlined_call_operand.vmem [shape: bf16[8,32], index: 3, kind: input, shape index: {}]   ;;  %s169_s4 = inlined_call_operand.vmem [shape: f32[32,16], index: 4, kind: input, shape index: {}]   ;;  %s170_s5 = inlined_call_operand.hbm [shape: f32[8,16], index: 5, kind: output, shape index: {}]  }
   0x1   :  { %v35_v0 = vld [vmem:[%s169_s4 + $0x18] sm:$0xff]  ;;  %v34_v1 = vld [vmem:[%s169_s4 + $0x10] sm:$0xff]  ;;  %v33_v2 = vld [vmem:[%s169_s4 + $0x8] sm:$0xff] }
   0x2   :  { %52 = vmatpush.msra.mxu0 %v35_v0  ;;  %v21_v3 = vld [vmem:[%s165_s0] sm:$0xf] }
   0x3   :  { %v23_v4 = vld [vmem:[%s166_s1] sm:$0xf]  ;;  %v22_v5 = vunpack.c.l.bf16 %v21_v3 }
   0x4   :  { %v24_v6 = vunpack.c.l.bf16 %v23_v4  ;;  %v26_v7 = vld [vmem:[%s167_s2] sm:$0xf] }
   0x5   :  { %v29_v8 = vld [vmem:[%s168_s3] sm:$0xf] }
   0x6   :  { %10 = vsyncpa [#allocation3], 0  ;;  %53 = vmatpush.msra.mxu0 %v34_v1  ;;  %v27_v9 = vunpack.c.l.bf16 %v26_v7  ;;  %v32_v10 = vld [vmem:[%s169_s4] sm:$0xff]  ;;  %v25_v11 = vadd.f32 %v24_v6, %v22_v5  ;;  %v30_v12 = vunpack.c.l.bf16 %v29_v8  ;;  %vm36_vm0 = vcmask 261120   ;;  %s107_s0 = smov [#allocation2]   ;;  %s70_s3 = sshll.u32 %s170_s5, 4  ;;  %s71_s3 = int_to_ptr.hbm [resolvable:$true] %s70_s3 }
   0x7   :  { %s68_s1 = sshll.u32 %s107_s0, 4  ;;  %vm61_vm1 = vcmask 130048   ;;  %s69_s1 = int_to_ptr.vmem [resolvable:$true] %s68_s1 }
   0x8   :  { %54 = vmatpush.msra.mxu0 %v33_v2  ;;  %v28_v13 = vadd.f32 %v27_v9, %v25_v11 }
   0xa   :  { %55 = vmatpush.msra.mxu0 %v32_v10  ;;  %v31_v14 = vadd.f32 %v30_v12, %v28_v13 }
   0xc   :  { %79 = vmatmul.msk.f32.vlgmr.msra.gmra.mxu0 %vm36_vm0, %v31_v14 }
  0x89   :  { %v57_v15 = vpop.f32.mrf.mxu0 }
  0x8a   :  { %v60_v16 = vmax.f32 %v57_v15, 0.0 }
  0x8c   :  { %62 = vst.msk [vmem:[#allocation2] sm:$0xff] %vm61_vm1, %v60_v16 }
  0x8d   :  { %73 = dma.vmem_to_hbm [thread:$0]  %s69_s1, 128, %s71_s3, [#allocation3]  }
  0x8e   :  { %105 = dma.done.wait [#allocation3], 128  }
  0x8f   :  { %106 = vsyncadd [#allocation3], 4294967168 }
  0x90   :  { %78 = vsyncpa [#allocation3], 1 }

</bundles_post_ra>
